<compile_context>
chip_gen: v6e
topology: v6e:2x2x1
jax: 0.10.0
libtpu: 0.0.40
codegen_flags: <defaults>
</compile_context>

<pallas_src>
import jax
import jax.numpy as jnp
from jax.experimental import pallas as pl
from jax.experimental.pallas import tpu as pltpu

_LANE = 128


def _round_up(v, m):
    return ((v + m - 1) // m) * m


def _cdiv(a, b):
    return -(-a // b)


def _sublane(dtype):
    # Minimum sublane tile: 8 rows for 4-byte dtypes, 16 rows for 2-byte (bf16).
    return 16 if jnp.dtype(dtype).itemsize == 2 else 8


def _pick_tile(padded_dim, cap, align):
    """Pick (tile, new_padded_dim) with tile <= cap, tile % align == 0 (or tile
    == padded_dim), and new_padded_dim an exact multiple of tile with minimal
    extra padding.  Avoids the double round-up blowup (e.g. 304 -> 512)."""
    if padded_dim <= cap:
        return padded_dim, padded_dim
    n_blocks = _cdiv(padded_dim, cap)
    tile = _round_up(_cdiv(padded_dim, n_blocks), align)
    return tile, tile * n_blocks


# --------------------------------------------------------------------------
# Kernels
# --------------------------------------------------------------------------
def _linear_single_block_kernel(x_ref, w_ref, b_ref, o_ref):
    # Whole (padded) problem in one VMEM block: no grid, no K loop, no scratch.
    acc = jnp.dot(x_ref[...], w_ref[...], preferred_element_type=jnp.float32)
    o_ref[...] = (acc + b_ref[...]).astype(o_ref.dtype)


def _linear_tiled_kernel(x_ref, w_ref, b_ref, o_ref):
    # o_ref is float32 and doubles as the accumulator: its BlockSpec ignores k,
    # so the same output tile stays resident across the K axis.  This relies on
    # K being the LAST ("arbitrary") grid axis -- do not reorder the grid.
    k = pl.program_id(2)

    @pl.when(k == 0)
    def _():
        # Init with the grid-invariant bias row; (1, tn) broadcasts to (tm, tn).
        o_ref[...] = jnp.zeros_like(o_ref) + b_ref[...]

    o_ref[...] += jnp.dot(
        x_ref[...], w_ref[...], preferred_element_type=jnp.float32
    )


# --------------------------------------------------------------------------
# Wrappers
# --------------------------------------------------------------------------
def prepare_linear_params(weight, bias, compute_dtype=None):
    """One-time parameter preparation (call at param-load time, NOT per step):
    transpose weight to (IN, OUT), cast to the MXU compute dtype, zero-pad lane
    dims to multiples of 128.  Bias is kept in float32 for the f32 epilogue."""
    out_features, in_features = weight.shape
    cdt = jnp.dtype(compute_dtype) if compute_dtype is not None else jnp.dtype(weight.dtype)

    kp = _round_up(in_features, _LANE)
    np_ = _round_up(out_features, _LANE)

    w_t = weight.T.astype(cdt)
    if (kp, np_) != (in_features, out_features):
        w_p = jnp.zeros((kp, np_), cdt).at[:in_features, :out_features].set(w_t)
    else:
        w_p = w_t

    b32 = bias.astype(jnp.float32)
    if np_ != out_features:
        b_p = jnp.zeros((1, np_), jnp.float32).at[0, :out_features].set(b32)
    else:
        b_p = b32.reshape(1, np_)

    return w_p, b_p, in_features, out_features


def linear_forward(x, w_p, b_p, in_features, out_features, *,
                   tile_m=512, tile_n=256, tile_k=512):
    """y = x @ W.T + b using the pre-prepared (transposed, padded) params."""
    batch, xin = x.shape
    assert xin == in_features, "x inner dim must match weight inner dim"

    cdt = w_p.dtype
    kp, np_ = w_p.shape
    sub = _sublane(cdt)
    mp = _round_up(batch, sub)

    x_c = x.astype(cdt)
    # Skip the pad copy when already aligned (the common, fast case).
    if (mp, kp) != (batch, xin):
        x_p = jnp.zeros((mp, kp), cdt).at[:batch, :xin].set(x_c)
    else:
        x_p = x_c

    out_dtype = jnp.float32  # nn.Linear with f32 params -> f32 output

    # ---------------- sub-tile problem: single-block, grid-less kernel -------
    if mp <= tile_m and np_ <= tile_n and kp <= tile_k:
        out_p = pl.pallas_call(
            _linear_single_block_kernel,
            out_shape=jax.ShapeDtypeStruct((mp, np_), out_dtype),
            in_specs=[pl.BlockSpec(memory_space=pltpu.MemorySpace.VMEM)] * 3,
            out_specs=pl.BlockSpec(memory_space=pltpu.MemorySpace.VMEM),
        )(x_p, w_p, b_p)
        return out_p[:batch, :out_features]

    # ---------------- tiled (M, N, K) path -----------------------------------
    tm, mp2 = _pick_tile(mp, tile_m, sub)
    tn, np2 = _pick_tile(np_, tile_n, _LANE)
    tk, kp2 = _pick_tile(kp, tile_k, _LANE)

    # v7x has 2 TensorCores: make sure at least one "parallel" axis has >=2 blocks.
    if mp2 // tm == 1 and np2 // tn == 1:
        if np2 >= 2 * _LANE:
            cap_n = max(_LANE, (np2 // 2) // _LANE * _LANE)
            tn, np2 = _pick_tile(np2, cap_n, _LANE)
        elif mp2 >= 2 * sub:
            cap_m = max(sub, (mp2 // 2) // sub * sub)
            tm, mp2 = _pick_tile(mp2, cap_m, sub)

    # Re-pad only if the tile-exact padded extents grew.
    if (mp2, kp2) != x_p.shape:
        x_p = jnp.zeros((mp2, kp2), cdt).at[:mp, :kp].set(x_p)
    if (kp2, np2) != w_p.shape:
        w_p = jnp.zeros((kp2, np2), cdt).at[:kp, :np_].set(w_p)
    if np2 != b_p.shape[1]:
        b_p = jnp.zeros((1, np2), jnp.float32).at[:, :np_].set(b_p)

    grid = (mp2 // tm, np2 // tn, kp2 // tk)

    # Double-buffered VMEM estimate; raise the scoped-VMEM limit only if the
    # defaults (16 MiB v5e / 32 MiB v6e,v7x) would be too small for the tiles.
    csz = jnp.dtype(cdt).itemsize
    vmem_bytes = 2 * ((tm * tk + tk * tn) * csz + (tm * tn + tn) * 4)
    cp_kwargs = dict(dimension_semantics=("parallel", "parallel", "arbitrary"))
    if vmem_bytes > 12 * 1024 * 1024:
        cp_kwargs["vmem_limit_bytes"] = min(int(vmem_bytes * 1.5), 64 * 1024 * 1024)

    out_p = pl.pallas_call(
        _linear_tiled_kernel,
        out_shape=jax.ShapeDtypeStruct((mp2, np2), out_dtype),
        grid_spec=pltpu.PrefetchScalarGridSpec(
            num_scalar_prefetch=0,
            grid=grid,
            in_specs=[
                pl.BlockSpec((tm, tk), lambda i, j, k: (i, k)),   # x tile
                pl.BlockSpec((tk, tn), lambda i, j, k: (k, j)),   # W^T tile
                pl.BlockSpec((1, tn), lambda i, j, k: (0, j)),    # bias row (f32)
            ],
            out_specs=pl.BlockSpec((tm, tn), lambda i, j, k: (i, j)),
        ),
        compiler_params=pltpu.CompilerParams(**cp_kwargs),
    )(x_p, w_p, b_p)

    return out_p[:batch, :out_features]


if __name__ == "__main__":
    key = jax.random.PRNGKey(0)
    HIGHEST = jax.lax.Precision.HIGHEST

    # ---- Case 1: the module's own small shape (batch=16, in=32, out=8). ----
    inputSize, outputSize, batch = 32, 8, 16
    kx, kw, kb, key = jax.random.split(key, 4)
    bound = 1.0 / (inputSize ** 0.5)
    weight = jax.random.uniform(kw, (outputSize, inputSize), jnp.float32, -bound, bound)
    bias = jax.random.uniform(kb, (outputSize,), jnp.float32, -bound, bound)
    x = jax.random.normal(kx, (batch, inputSize), jnp.float32)

    params = prepare_linear_params(weight, bias)          # one-time prep
    y = jax.block_until_ready(linear_forward(x, *params))
    y_ref = jnp.dot(x, weight.T, precision=HIGHEST) + bias
    assert y.shape == (batch, outputSize)
    assert jnp.allclose(y, y_ref, atol=1e-5, rtol=1e-5), "single-block f32 mismatch"

    # ---- Case 2: exercise the tiled (M, N, K) path with ragged dims. --------
    inputSize2, outputSize2, batch2 = 384, 200, 300
    kx2, kw2, kb2, key = jax.random.split(key, 4)
    bound2 = 1.0 / (inputSize2 ** 0.5)
    weight2 = jax.random.uniform(kw2, (outputSize2, inputSize2), jnp.float32, -bound2, bound2)
    bias2 = jax.random.uniform(kb2, (outputSize2,), jnp.float32, -bound2, bound2)
    x2 = jax.random.normal(kx2, (batch2, inputSize2), jnp.float32)

    params2 = prepare_linear_params(weight2, bias2)
    y2 = jax.block_until_ready(
        linear_forward(x2, *params2, tile_m=128, tile_n=128, tile_k=128))
    y2_ref = jnp.dot(x2, weight2.T, precision=HIGHEST) + bias2
    assert y2.shape == (batch2, outputSize2)
    assert jnp.allclose(y2, y2_ref, atol=1e-3, rtol=1e-3), "tiled f32 mismatch"

    # ---- Case 3: bf16 compute path (MXU-native), f32 accumulate + epilogue. --
    params2_bf16 = prepare_linear_params(weight2, bias2, compute_dtype=jnp.bfloat16)
    y3 = jax.block_until_ready(
        linear_forward(x2, *params2_bf16, tile_m=128, tile_n=128, tile_k=128))
    xr = x2.astype(jnp.bfloat16).astype(jnp.float32)
    wr = weight2.T.astype(jnp.bfloat16).astype(jnp.float32)
    y3_ref = jnp.dot(xr, wr, precision=HIGHEST) + bias2
    assert jnp.allclose(y3, y3_ref, atol=5e-3, rtol=5e-3), "tiled bf16 mismatch"

    print("KERNEL_OK")
</pallas_src>

<mosaic_0001>
module attributes {stable_mosaic.version = 11 : i64} {
  func.func @_linear_single_block_kernel(%arg0: memref<16x128xf32, #tpu.memory_space<vmem>>, %arg1: memref<128x128xf32, #tpu.memory_space<vmem>>, %arg2: memref<1x128xf32, #tpu.memory_space<vmem>>, %arg3: memref<16x128xf32, #tpu.memory_space<vmem>>) attributes {dimension_semantics = [], scalar_prefetch = 0 : i64, scratch_operands = 0 : i64, tpu.core_type = #tpu.core_type<tc>} {
    %c0 = arith.constant 0 : index
    %c0_0 = arith.constant 0 : index
    %0 = vector.load %arg0[%c0, %c0_0] : memref<16x128xf32, #tpu.memory_space<vmem>>, vector<16x128xf32>
    %c0_1 = arith.constant 0 : index
    %c0_2 = arith.constant 0 : index
    %1 = vector.load %arg1[%c0_1, %c0_2] : memref<128x128xf32, #tpu.memory_space<vmem>>, vector<128x128xf32>
    %cst = arith.constant dense<0.000000e+00> : vector<16x128xf32>
    %2 = tpu.matmul %0, %1, %cst {dimension_numbers = #tpu.dot_dimension_numbers<[1], [0], [0], [1], [0, 0, 1, 1], [], []>} : vector<16x128xf32>, vector<128x128xf32>, vector<16x128xf32> -> vector<16x128xf32>
    %c0_3 = arith.constant 0 : index
    %c0_4 = arith.constant 0 : index
    %3 = vector.load %arg2[%c0_3, %c0_4] : memref<1x128xf32, #tpu.memory_space<vmem>>, vector<1x128xf32>
    %4 = vector.broadcast %3 : vector<1x128xf32> to vector<16x128xf32>
    %5 = arith.addf %2, %4 : vector<16x128xf32>
    %c0_5 = arith.constant 0 : index
    %c0_6 = arith.constant 0 : index
    %6 = vector.load %arg3[%c0_5, %c0_6] : memref<16x128xf32, #tpu.memory_space<vmem>>, vector<16x128xf32>
    tpu.vector_store %arg3[%c0_5, %c0_6], %5 {strides = array<i32>} : memref<16x128xf32, #tpu.memory_space<vmem>>, vector<16x128xf32>,
    return
  }
}

</mosaic_0001>

<bundles_post_ra>
// kernel: tpu_custom_call.1
= control target key start
LH: loop header
LB: loop body
LE: loop exit
PB: predicated region body
PF: predicated region fallthrough
CT: control target
= control target key end

     0   :  { %8 = vsyncpa [#allocation3], 0  ;;  %s334_s0 = inlined_call_operand.hbm [shape: f32[16,128], index: 0, kind: input, shape index: {}]   ;;  %s335_s1 = inlined_call_operand.hbm [shape: f32[128,128], index: 1, kind: input, shape index: {}]   ;;  %s336_s2 = inlined_call_operand.vmem [shape: f32[1,128], index: 2, kind: input, shape index: {}]   ;;  %s337_s3 = inlined_call_operand.hbm [shape: f32[16,128], index: 3, kind: output, shape index: {}]  }
   0x1   :  { %9 = vsyncpa [#allocation6], 0 }
   0x2   :  { %10 = vsyncpa [#allocation4], 0  ;;  %s288_s12 = smov [#allocation2]  }
   0x3   :  { %s16_s13 = sshll.u32 %s288_s12, 4  ;;  %s17_s13 = int_to_ptr.vmem [resolvable:$true] %s16_s13 }
   0x4   :  { %s230_s14 = scalar_lea.vmem %s17_s13, 256  ;;  %p235_p1 = scmp.lt.s32.totalorder %s17_s13, %s17_s13 }
   0x5   :  { %p231_p0 = scmp.ne.s32.totalorder %s17_s13, %s230_s14  ;;  %p236_p2 = scmp.lt.s32.totalorder %s230_s14, %s230_s14 }
   0x7   :  { %p237_p3 = por %p236_p2, %p235_p1 }
   0x9   :  { %p238_p4 = pnand %p237_p3, %p231_p0 }
   0xb   :  { %241 = shalt.err (!%p238_p4)
}
   0xc   :  { %s289_s15 = smov 128   ;;  %s290_s16 = smov 8  }
   0xd   :  { %22 = dma.hbm_to_vmem [thread:$0]  %s334_s0, 256, %s17_s13, [#allocation3], %s289_s15, %s289_s15, %s290_s16  }
   0xe   :  { %s291_s19 = smov [#allocation5]  }
   0xf   :  { %s28_s20 = sshll.u32 %s291_s19, 4  ;;  %s29_s20 = int_to_ptr.vmem [resolvable:$true] %s28_s20 }
  0x10   :  { %s250_s21 = scalar_lea.vmem %s29_s20, 2048  ;;  %p255_p6 = scmp.lt.s32.totalorder %s29_s20, %s29_s20 }
  0x11   :  { %p251_p5 = scmp.ne.s32.totalorder %s29_s20, %s250_s21  ;;  %p256_p7 = scmp.lt.s32.totalorder %s250_s21, %s250_s21 }
  0x13   :  { %p257_p8 = por %p256_p7, %p255_p6 }
  0x15   :  { %p258_p9 = pnand %p257_p8, %p251_p5 }
  0x17   :  { %261 = shalt.err (!%p258_p9)
}
  0x18   :  { %34 = dma.hbm_to_vmem [thread:$0]  %s335_s1, 2048, %s29_s20, [#allocation6], %s289_s15, %s289_s15, %s290_s16  }
  0x19   :  { %282 = dma.done.wait [#allocation3], 256  }
  0x1a   :  { %283 = vsyncadd [#allocation3], 4294967040 }
  0x1b   :  { %284 = dma.done.wait [#allocation6], 2048  }
  0x1c   :  { %285 = vsyncadd [#allocation6], 4294965248  ;;  %v60_v0 = vld [vmem:[#allocation5 + $0x78] sm:$0xff]  ;;  %v59_v1 = vld [vmem:[#allocation5 + $0x70] sm:$0xff]  ;;  %s292_s24 = smov [#allocation7]  }
  0x1d   :  { %182 = vmatprep.subr.mxu0 %v60_v0  ;;  %v58_v2 = vld [vmem:[#allocation5 + $0x68] sm:$0xff]  ;;  %v57_v3 = vld [vmem:[#allocation5 + $0x60] sm:$0xff]  ;;  %v43_v4 = vld [vmem:[#allocation2] sm:$0xff]  ;;  %s150_s25 = sshll.u32 %s292_s24, 4  ;;  %s151_s25 = int_to_ptr.vmem [resolvable:$true] %s150_s25 }
  0x1e   :  { %183 = vmatpush3.msra.mxu0 %v60_v0  ;;  %v56_v5 = vld [vmem:[#allocation5 + $0x58] sm:$0xff]  ;;  %214 = vmatprep.mubr.f32.mxu0 %v43_v4  ;;  %v55_v6 = vld [vmem:[#allocation5 + $0x50] sm:$0xff]  ;;  %v54_v7 = vld [vmem:[#allocation5 + $0x48] sm:$0xff]  ;;  %s262_s26 = scalar_lea.vmem %s151_s25, 256  ;;  %p267_p11 = scmp.lt.s32.totalorder %s151_s25, %s151_s25 }
  0x1f   :  { %184 = vmatprep.subr.mxu0 %v59_v1  ;;  %v53_v8 = vld [vmem:[#allocation5 + $0x40] sm:$0xff]  ;;  %v52_v9 = vld [vmem:[#allocation5 + $0x38] sm:$0xff]  ;;  %v51_v10 = vld [vmem:[#allocation5 + $0x30] sm:$0xff]  ;;  %p263_p10 = scmp.ne.s32.totalorder %s151_s25, %s262_s26  ;;  %p268_p12 = scmp.lt.s32.totalorder %s262_s26, %s262_s26 }
  0x20   :  { %185 = vmatpush3.msra.mxu0 %v59_v1  ;;  %v50_v11 = vld [vmem:[#allocation5 + $0x28] sm:$0xff]  ;;  %v49_v12 = vld [vmem:[#allocation5 + $0x20] sm:$0xff]  ;;  %v48_v13 = vld [vmem:[#allocation5 + $0x18] sm:$0xff] }
  0x21   :  { %186 = vmatprep.subr.mxu0 %v58_v2  ;;  %v47_v14 = vld [vmem:[#allocation5 + $0x10] sm:$0xff]  ;;  %v46_v15 = vld [vmem:[#allocation5 + $0x8] sm:$0xff]  ;;  %v45_v16 = vld [vmem:[#allocation5] sm:$0xff]  ;;  %p269_p13 = por %p268_p12, %p267_p11 }
  0x22   :  { %187 = vmatpush3.msra.mxu0 %v58_v2  ;;  %v44_v17 = vld [vmem:[#allocation2 + $0x8] sm:$0xff]  ;;  %v163_v18 = vld [vmem:[%s336_s2] ss:$0 sm:$0xff] }
  0x23   :  { %188 = vmatprep.subr.mxu0 %v57_v3  ;;  %p270_p0 = pnand %p269_p13, %p263_p10 }
  0x24   :  { %189 = vmatpush3.msra.mxu0 %v57_v3 }
  0x25   :  { %190 = vmatprep.subr.mxu0 %v56_v5 }
  0x26   :  { %191 = vmatpush3.msra.mxu0 %v56_v5 }
  0x27   :  { %192 = vmatprep.subr.mxu0 %v55_v6 }
  0x28   :  { %193 = vmatpush3.msra.mxu0 %v55_v6 }
  0x29   :  { %194 = vmatprep.subr.mxu0 %v54_v7 }
  0x2a   :  { %195 = vmatpush3.msra.mxu0 %v54_v7 }
  0x2b   :  { %196 = vmatprep.subr.mxu0 %v53_v8 }
  0x2c   :  { %197 = vmatpush3.msra.mxu0 %v53_v8 }
  0x2d   :  { %198 = vmatprep.subr.mxu0 %v52_v9 }
  0x2e   :  { %199 = vmatpush3.msra.mxu0 %v52_v9 }
  0x2f   :  { %200 = vmatprep.subr.mxu0 %v51_v10 }
  0x30   :  { %201 = vmatpush3.msra.mxu0 %v51_v10 }
  0x31   :  { %202 = vmatprep.subr.mxu0 %v50_v11 }
  0x32   :  { %203 = vmatpush3.msra.mxu0 %v50_v11 }
  0x33   :  { %204 = vmatprep.subr.mxu0 %v49_v12 }
  0x34   :  { %205 = vmatpush3.msra.mxu0 %v49_v12 }
  0x35   :  { %206 = vmatprep.subr.mxu0 %v48_v13 }
  0x36   :  { %207 = vmatpush3.msra.mxu0 %v48_v13 }
  0x37   :  { %208 = vmatprep.subr.mxu0 %v47_v14 }
  0x38   :  { %209 = vmatpush3.msra.mxu0 %v47_v14 }
  0x39   :  { %210 = vmatprep.subr.mxu0 %v46_v15 }
  0x3a   :  { %211 = vmatpush3.msra.mxu0 %v46_v15 }
  0x3b   :  { %212 = vmatprep.subr.mxu0 %v45_v16 }
  0x3c   :  { %213 = vmatpush3.msra.mxu0 %v45_v16 }
  0x3d   :  { %215 = vmatmul.mubr.f32.vlgmr.msra.gmra.mxu0 %v44_v17 }
  0xfd   :  { %v216_v19 = vpop.f32.mrf.mxu0 }
  0xfe   :  { %v140_v20 = vadd.f32 %v216_v19, %v163_v18 }
  0xff   :  { %v134_v21 = vpop.f32.mrf.mxu0 }
 0x100   :  { %144 = vst [vmem:[#allocation7 + $0x8] sm:$0xff] %v140_v20  ;;  %v135_v22 = vadd.f32 %v163_v18, %v134_v21 }
 0x102   :  { %143 = vst [vmem:[#allocation7] sm:$0xff] %v135_v22 }
 0x103   :  { %273 = shalt.err (!%p270_p0)
}
 0x104   :  { %156 = dma.vmem_to_hbm [thread:$0]  %s151_s25, 256, %s337_s3, [#allocation4], %s289_s15, %s289_s15, %s290_s16  }
 0x105   :  { %286 = dma.done.wait [#allocation4], 256  }
 0x106   :  { %287 = vsyncadd [#allocation4], 4294967040 }
 0x107   :  { %160 = vsyncpa [#allocation3], 1 }
 0x108   :  { %161 = vsyncpa [#allocation6], 1 }
 0x109   :  { %162 = vsyncpa [#allocation4], 1 }

</bundles_post_ra>
